<compile_context>
chip_gen: v6e
topology: v6e:2x2x1
jax: 0.10.0
libtpu: 0.0.40
codegen_flags: <defaults>
</compile_context>

<pallas_src>
import functools

import jax
import jax.numpy as jnp
from jax.experimental import pallas as pl
from jax.experimental.pallas import tpu as pltpu


def _cdiv(a, b):
    return -(-a // b)


def _round_up(x, m):
    return _cdiv(x, m) * m


def _vmem_budget():
    """(usable budget, physical capacity) in bytes for the current TPU gen."""
    cap = 64 << 20                      # conservative default (v7x per-TC VMEM)
    try:
        info = pltpu.get_tpu_info()
        cap = int(getattr(info, "vmem_capacity_bytes", cap)) or cap
    except Exception:
        pass
    # ~70% usable: ~44 MiB on v7x (64 MiB), ~90 MiB on v5e/v6e (128 MiB).
    return int(cap * 0.70), cap


def _num_tensorcores():
    """Best-effort TensorCore-per-chip count (perf preference only)."""
    try:
        dev = jax.devices()[0]
        nc = getattr(dev, "num_cores", None)
        if isinstance(nc, int) and nc > 0:
            return nc
        kind = str(getattr(dev, "device_kind", "")).lower()
        if any(s in kind for s in ("v4", "v5p", "v7", "7x")):
            return 2
    except Exception:
        pass
    return 1


def _choose_batch_tile(B, num_cores, cap=128):
    """Return (B_pad, Bt).  Bt sublane-aligned; even #tiles on megacore parts
    so the 'parallel' batch axis shards evenly across TensorCores."""
    if B <= 8:
        return B, B                     # full-dim block is always legal
    B_pad = _round_up(B, 8)
    tiles = max(num_cores, _cdiv(B_pad, cap))
    if num_cores > 1:
        tiles = _round_up(tiles, num_cores)
    Bt = _round_up(_cdiv(B_pad, tiles), 8)
    B_pad = _round_up(B_pad, Bt)
    return B_pad, Bt


def _choose_time_chunk(T, Bt, G, gx_itemsize, gx_budget, cap=256):
    """Largest time chunk whose (double-buffered) gate slab fits the budget,
    then rebalanced so padding waste is < one grid step."""
    per_step = 2 * Bt * G * gx_itemsize            # 2x buffered gates chunk
    Tc_max = max(1, min(cap, T, max(gx_budget, 0) // per_step))
    n_t = _cdiv(T, Tc_max)
    Tc = _cdiv(T, n_t)
    return n_t * Tc, Tc                            # (T_pad, Tc)


# ----------------------------------------------------------------------------
# Pallas kernel: LSTM recurrence only.  One grid step = (batch tile, time
# chunk); inside, a partially-unrolled loop over Tc timesteps.
# ----------------------------------------------------------------------------
def lstm_recurrence_kernel(gx_ref, whh_ref, h_out_ref, h_sc, c_sc):
    """
    gx_ref   : (Tc, Bt, 4H) bf16/f32   precomputed x@W_ih^T + b_ih + b_hh
    whh_ref  : (H, 4H)  bf16/f32       VMEM-resident recurrent weight
    h_out_ref: (Bt, H)  f32            final hidden state (written last chunk)
    h_sc/c_sc: (Bt, H)  f32            recurrent state across time chunks
    """
    t_chunk = pl.program_id(1)

    @pl.when(t_chunk == 0)
    def _():
        h_sc[...] = jnp.zeros_like(h_sc)
        c_sc[...] = jnp.zeros_like(c_sc)

    H = h_sc.shape[1]
    Tc = gx_ref.shape[0]
    whh = whh_ref[...]                  # hoisted: read once per chunk

    def sigmoid(x):
        # Single-EUP form: sigmoid(x) == 0.5*tanh(0.5*x) + 0.5 (avoids the
        # exp + reciprocal lowering -> one transcendental push per element).
        return 0.5 * jnp.tanh(0.5 * x) + 0.5

    def step(i, carry):
        h, c = carry
        # Only the serial part stays in the loop: h_prev @ W_hh^T (bf16
        # operands, f32 accumulation) added to the streamed pre-activations.
        gates = (gx_ref[i].astype(jnp.float32)
                 + jnp.dot(h.astype(whh.dtype), whh,
                           preferred_element_type=jnp.float32))
        # NOTE: at H not a multiple of 128 these gate slices are sub-lane-tile;
        # production configs should use H % 128 == 0 (model-config choice).
        i_g = sigmoid(gates[:, 0 * H:1 * H])
        f_g = sigmoid(gates[:, 1 * H:2 * H])
        g_g = jnp.tanh(gates[:, 2 * H:3 * H])
        o_g = sigmoid(gates[:, 3 * H:4 * H])
        c = f_g * c + i_g * g_g
        h = o_g * jnp.tanh(c)
        return (h, c)

    # Partial unroll: keeps LLO scheduler visibility without blowing up vreg
    # live ranges / spills the way a fully-unrolled 32+ step body does.
    h, c = jax.lax.fori_loop(0, Tc, step, (h_sc[...], c_sc[...]),
                             unroll=min(8, Tc))
    h_sc[...] = h
    c_sc[...] = c

    @pl.when(t_chunk == pl.num_programs(1) - 1)
    def _():
        h_out_ref[...] = h


def lstm_recurrent_pallas(gates_x, w_hh_t):
    """gates_x: (T, B, 4H) time-major; w_hh_t: (H, 4H).  Returns h_T: (B, H) f32."""
    T, B, G = gates_x.shape
    H = w_hh_t.shape[0]
    assert G == 4 * H

    budget, cap = _vmem_budget()
    num_cores = _num_tensorcores()
    gx_item = gates_x.dtype.itemsize
    whh_item = w_hh_t.dtype.itemsize

    B_pad, Bt = _choose_batch_tile(B, num_cores)
    fixed = (H * G * whh_item           # resident W_hh^T (single copy)
             + 2 * Bt * H * 4           # double-buffered output block
             + 2 * Bt * H * 4           # h/c scratch
             + (2 << 20))               # compiler internal-scratch headroom
    T_pad, Tc = _choose_time_chunk(T, Bt, G, gx_item, budget - fixed)

    # Padding is state-neutral: time is LEFT-padded with zero pre-activations
    # (h=c=0 is a fixed point of the LSTM step under zero gates); batch pad
    # rows are sliced off below.
    if (T_pad != T) or (B_pad != B):
        gates_x = jnp.pad(gates_x, ((T_pad - T, 0), (0, B_pad - B), (0, 0)))

    n_b, n_t = B_pad // Bt, T_pad // Tc

    need = (2 * Tc * Bt * G * gx_item   # gates chunks (2x buffered)
            + H * G * whh_item          # resident W_hh^T
            + 2 * Bt * H * 4            # output block
            + 2 * Bt * H * 4)           # h/c scratch
    vmem_limit = int(min(cap * 9 // 10, max(need + (4 << 20), 16 << 20)))

    h_t = pl.pallas_call(
        lstm_recurrence_kernel,
        out_shape=jax.ShapeDtypeStruct((B_pad, H), jnp.float32),
        grid_spec=pltpu.PrefetchScalarGridSpec(
            num_scalar_prefetch=0,
            grid=(n_b, n_t),                              # (parallel batch, serial time)
            in_specs=[
                # streamed gate chunks (auto double-buffered)
                pl.BlockSpec((Tc, Bt, G), lambda b, t: (t, b, 0)),
                # whole-array VMEM resident recurrent weight (single copy,
                # no pipelining / no wasted double buffer)
                pl.BlockSpec(memory_space=pltpu.MemorySpace.VMEM),
            ],
            out_specs=pl.BlockSpec((Bt, H), lambda b, t: (b, 0)),
            scratch_shapes=[
                pltpu.VMEM((Bt, H), jnp.float32),         # h state
                pltpu.VMEM((Bt, H), jnp.float32),         # c state
            ],
        ),
        compiler_params=pltpu.CompilerParams(
            dimension_semantics=("parallel", "arbitrary"),
            vmem_limit_bytes=vmem_limit),
    )(gates_x, w_hh_t)

    return h_t[:B] if B_pad != B else h_t


# ----------------------------------------------------------------------------
# Module equivalent of RNN.forward
# ----------------------------------------------------------------------------
def init_params(key, vocab_size, embed_size, hidden_size, output_size, pad_idx):
    ks = jax.random.split(key, 7)
    k = 1.0 / jnp.sqrt(hidden_size)

    embedding = jax.random.normal(ks[0], (vocab_size, embed_size), jnp.float32)
    embedding = embedding.at[pad_idx].set(0.0)   # padding_idx row is zero

    w_ih = jax.random.uniform(ks[1], (4 * hidden_size, embed_size),
                              jnp.float32, -k, k)
    w_hh = jax.random.uniform(ks[2], (4 * hidden_size, hidden_size),
                              jnp.float32, -k, k)
    b_ih = jax.random.uniform(ks[3], (4 * hidden_size,), jnp.float32, -k, k)
    b_hh = jax.random.uniform(ks[4], (4 * hidden_size,), jnp.float32, -k, k)

    kl = 1.0 / jnp.sqrt(hidden_size)
    w_lin = jax.random.uniform(ks[5], (output_size, hidden_size),
                               jnp.float32, -kl, kl)
    b_lin = jax.random.uniform(ks[6], (output_size,), jnp.float32, -kl, kl)

    return dict(embedding=embedding, w_ih=w_ih, w_hh=w_hh, b_ih=b_ih,
                b_hh=b_hh, w_lin=w_lin, b_lin=b_lin)


@functools.partial(jax.jit, static_argnames=("compute_dtype",))
def rnn_forward(params, text, text_lengths, *, compute_dtype=jnp.bfloat16):
    # text_lengths is unused, exactly as in the PyTorch forward.
    del text_lengths
    B, T = text.shape
    H = params["w_hh"].shape[1]
    E = params["w_ih"].shape[1]

    # Time-major embedding gather: transpose the tiny int32 token tensor so
    # the big (T,B,4H) pre-activation tensor is produced time-major directly
    # (no HBM round-trip transposing the largest tensor in the pipeline).
    emb = jnp.take(params["embedding"], text.T, axis=0)            # (T, B, E)

    # HOISTED input projection: one (T*B, E) @ (E, 4H) matmul with the bias
    # folded in -- no serial dependency, full-MXU, f32 accumulation.
    w_ih_t = params["w_ih"].T.astype(compute_dtype)                # (E, 4H)
    b_sum = (params["b_ih"] + params["b_hh"]).astype(jnp.float32)  # (4H,)
    x2d = emb.reshape(T * B, E).astype(compute_dtype)
    gates_x = (jnp.dot(x2d, w_ih_t, preferred_element_type=jnp.float32)
               + b_sum[None, :]).reshape(T, B, 4 * H)

    # Stream the dominant tensor + recurrent weight in compute_dtype (bf16 by
    # default: halves HBM traffic, VMEM residency, and MXU passes).  The
    # in-kernel adds/activations and h/c state remain f32.
    gates_x = gates_x.astype(compute_dtype)
    w_hh_t = params["w_hh"].T.astype(compute_dtype)                # (H, 4H)
    h_t = lstm_recurrent_pallas(gates_x, w_hh_t)                   # (B, H) f32

    # Final Linear on the last hidden state in XLA (O=4 is lane-sparse; keep
    # it out of the kernel's store path and drop W_lin/b_lin kernel residency).
    return h_t @ params["w_lin"].T + params["b_lin"]


# Pure-JAX reference (lax.scan LSTM) for a correctness check.
def rnn_forward_ref(params, text, text_lengths):
    del text_lengths
    emb = jnp.take(params["embedding"], text, axis=0)              # (B, T, E)
    B = emb.shape[0]
    H = params["w_hh"].shape[1]

    def step(carry, x_t):
        h, c = carry
        gates = (x_t @ params["w_ih"].T + h @ params["w_hh"].T
                 + params["b_ih"] + params["b_hh"])
        i_g = jax.nn.sigmoid(gates[:, 0 * H:1 * H])
        f_g = jax.nn.sigmoid(gates[:, 1 * H:2 * H])
        g_g = jnp.tanh(gates[:, 2 * H:3 * H])
        o_g = jax.nn.sigmoid(gates[:, 3 * H:4 * H])
        c = f_g * c + i_g * g_g
        h = o_g * jnp.tanh(c)
        return (h, c), None

    h0 = jnp.zeros((B, H), jnp.float32)
    (hT, _), _ = jax.lax.scan(step, (h0, h0), jnp.transpose(emb, (1, 0, 2)))
    return hT @ params["w_lin"].T + params["b_lin"]


if __name__ == "__main__":
    vocab_size, embed_size, hidden_size, output_size, pad_idx = 20, 32, 32, 4, 0
    B, T = 2, 8

    key = jax.random.PRNGKey(0)
    k_param, k_text = jax.random.split(key)
    params = init_params(k_param, vocab_size, embed_size, hidden_size,
                         output_size, pad_idx)

    text = jax.random.randint(k_text, (B, T), 0, vocab_size, dtype=jnp.int32)
    text_lengths = jnp.full((B,), T, dtype=jnp.int32)   # unused by forward

    ref = rnn_forward_ref(params, text, text_lengths)

    # f32 path: must match the pure-JAX reference tightly.
    out_f32 = rnn_forward(params, text, text_lengths,
                          compute_dtype=jnp.float32)
    out_f32 = jax.block_until_ready(out_f32)
    assert out_f32.shape == (B, output_size)
    assert jnp.allclose(out_f32, ref, atol=1e-4, rtol=1e-4), (out_f32, ref)

    # Default (bf16 operands, f32 accumulation / activations / state):
    # validate within bf16 matmul tolerance.
    out = rnn_forward(params, text, text_lengths)
    out = jax.block_until_ready(out)
    assert out.shape == (B, output_size)
    assert jnp.allclose(out, ref, atol=1e-1, rtol=1e-1), (out, ref)

    print("KERNEL_OK")
</pallas_src>

<mosaic_0001>
module attributes {stable_mosaic.version = 11 : i64} {
  func.func @lstm_recurrence_kernel(%arg0: i32, %arg1: i32, %arg2: memref<8x2x128xf32, #tpu.memory_space<vmem>>, %arg3: memref<32x128xf32, #tpu.memory_space<vmem>>, %arg4: memref<2x32xf32, #tpu.memory_space<vmem>>, %arg5: memref<2x32xf32, #tpu.memory_space<vmem>>, %arg6: memref<2x32xf32, #tpu.memory_space<vmem>>) attributes {dimension_semantics = [#tpu.dimension_semantics<parallel>, #tpu.dimension_semantics<arbitrary>], iteration_bounds = array<i64: 1, 1>, scalar_prefetch = 0 : i64, scratch_operands = 2 : i64, tpu.core_type = #tpu.core_type<tc>, window_params = [{transform_indices = @transform_0, window_bounds = array<i64: 8, 2, 128>}, {pipeline_mode = #tpu.pipeline_mode<synchronous>, transform_indices = @transform_1, window_bounds = array<i64: 32, 128>}, {transform_indices = @transform_2, window_bounds = array<i64: 2, 32>}]} {
    %c0_i32 = arith.constant 0 : i32
    %0 = arith.cmpi eq, %arg1, %c0_i32 : i32
    %1 = arith.extui %0 : i1 to i32
    %c0_i32_0 = arith.constant 0 : i32
    %2 = arith.cmpi ne, %1, %c0_i32_0 : i32
    scf.if %2 {
      %cst_108 = arith.constant 0.000000e+00 : f32
      %299 = vector.broadcast %cst_108 : f32 to vector<2x32xf32>
      %c0_109 = arith.constant 0 : index
      %c0_110 = arith.constant 0 : index
      %300 = vector.load %arg5[%c0_109, %c0_110] : memref<2x32xf32, #tpu.memory_space<vmem>>, vector<2x32xf32>
      tpu.vector_store %arg5[%c0_109, %c0_110], %299 {strides = array<i32>} : memref<2x32xf32, #tpu.memory_space<vmem>>, vector<2x32xf32>,
      %cst_111 = arith.constant 0.000000e+00 : f32
      %301 = vector.broadcast %cst_111 : f32 to vector<2x32xf32>
      %c0_112 = arith.constant 0 : index
      %c0_113 = arith.constant 0 : index
      %302 = vector.load %arg6[%c0_112, %c0_113] : memref<2x32xf32, #tpu.memory_space<vmem>>, vector<2x32xf32>
      tpu.vector_store %arg6[%c0_112, %c0_113], %301 {strides = array<i32>} : memref<2x32xf32, #tpu.memory_space<vmem>>, vector<2x32xf32>,
    } else {
    }
    %c0 = arith.constant 0 : index
    %c0_1 = arith.constant 0 : index
    %3 = vector.load %arg3[%c0, %c0_1] : memref<32x128xf32, #tpu.memory_space<vmem>>, vector<32x128xf32>
    %c0_2 = arith.constant 0 : index
    %c0_3 = arith.constant 0 : index
    %4 = vector.load %arg5[%c0_2, %c0_3] : memref<2x32xf32, #tpu.memory_space<vmem>>, vector<2x32xf32>
    %c0_4 = arith.constant 0 : index
    %c0_5 = arith.constant 0 : index
    %5 = vector.load %arg6[%c0_4, %c0_5] : memref<2x32xf32, #tpu.memory_space<vmem>>, vector<2x32xf32>
    %c0_i32_6 = arith.constant 0 : i32
    %6 = arith.index_cast %c0_i32_6 : i32 to index
    %c0_7 = arith.constant 0 : index
    %c0_8 = arith.constant 0 : index
    %7 = vector.load %arg2[%6, %c0_7, %c0_8] : memref<8x2x128xf32, #tpu.memory_space<vmem>>, vector<1x2x128xf32>
    %8 = vector.shape_cast %7 : vector<1x2x128xf32> to vector<2x128xf32>
    %cst = arith.constant dense<0.000000e+00> : vector<2x128xf32>
    %9 = tpu.matmul %4, %3, %cst {dimension_numbers = #tpu.dot_dimension_numbers<[1], [0], [0], [1], [0, 0, 1, 1], [], []>} : vector<2x32xf32>, vector<32x128xf32>, vector<2x128xf32> -> vector<2x128xf32>
    %10 = arith.addf %8, %9 : vector<2x128xf32>
    %11 = vector.extract_strided_slice %10 {offsets = [0, 0], sizes = [2, 32], strides = [1, 1]} : vector<2x128xf32> to vector<2x32xf32>
    %cst_9 = arith.constant 5.000000e-01 : f32
    %12 = vector.broadcast %cst_9 : f32 to vector<2x32xf32>
    %13 = arith.mulf %12, %11 : vector<2x32xf32>
    %14 = math.tanh %13 : vector<2x32xf32>
    %cst_10 = arith.constant 5.000000e-01 : f32
    %15 = vector.broadcast %cst_10 : f32 to vector<2x32xf32>
    %16 = arith.mulf %15, %14 : vector<2x32xf32>
    %cst_11 = arith.constant 5.000000e-01 : f32
    %17 = vector.broadcast %cst_11 : f32 to vector<2x32xf32>
    %18 = arith.addf %16, %17 : vector<2x32xf32>
    %19 = vector.extract_strided_slice %10 {offsets = [0, 32], sizes = [2, 32], strides = [1, 1]} : vector<2x128xf32> to vector<2x32xf32>
    %cst_12 = arith.constant 5.000000e-01 : f32
    %20 = vector.broadcast %cst_12 : f32 to vector<2x32xf32>
    %21 = arith.mulf %20, %19 : vector<2x32xf32>
    %22 = math.tanh %21 : vector<2x32xf32>
    %cst_13 = arith.constant 5.000000e-01 : f32
    %23 = vector.broadcast %cst_13 : f32 to vector<2x32xf32>
    %24 = arith.mulf %23, %22 : vector<2x32xf32>
    %cst_14 = arith.constant 5.000000e-01 : f32
    %25 = vector.broadcast %cst_14 : f32 to vector<2x32xf32>
    %26 = arith.addf %24, %25 : vector<2x32xf32>
    %27 = vector.extract_strided_slice %10 {offsets = [0, 64], sizes = [2, 32], strides = [1, 1]} : vector<2x128xf32> to vector<2x32xf32>
    %28 = math.tanh %27 : vector<2x32xf32>
    %29 = vector.extract_strided_slice %10 {offsets = [0, 96], sizes = [2, 32], strides = [1, 1]} : vector<2x128xf32> to vector<2x32xf32>
    %cst_15 = arith.constant 5.000000e-01 : f32
    %30 = vector.broadcast %cst_15 : f32 to vector<2x32xf32>
    %31 = arith.mulf %30, %29 : vector<2x32xf32>
    %32 = math.tanh %31 : vector<2x32xf32>
    %cst_16 = arith.constant 5.000000e-01 : f32
    %33 = vector.broadcast %cst_16 : f32 to vector<2x32xf32>
    %34 = arith.mulf %33, %32 : vector<2x32xf32>
    %cst_17 = arith.constant 5.000000e-01 : f32
    %35 = vector.broadcast %cst_17 : f32 to vector<2x32xf32>
    %36 = arith.addf %34, %35 : vector<2x32xf32>
    %37 = arith.mulf %26, %5 : vector<2x32xf32>
    %38 = arith.mulf %18, %28 : vector<2x32xf32>
    %39 = arith.addf %37, %38 : vector<2x32xf32>
    %40 = math.tanh %39 : vector<2x32xf32>
    %41 = arith.mulf %36, %40 : vector<2x32xf32>
    %c1_i32 = arith.constant 1 : i32
    %42 = arith.index_cast %c1_i32 : i32 to index
    %c0_18 = arith.constant 0 : index
    %c0_19 = arith.constant 0 : index
    %43 = vector.load %arg2[%42, %c0_18, %c0_19] : memref<8x2x128xf32, #tpu.memory_space<vmem>>, vector<1x2x128xf32>
    %44 = vector.shape_cast %43 : vector<1x2x128xf32> to vector<2x128xf32>
    %cst_20 = arith.constant dense<0.000000e+00> : vector<2x128xf32>
    %45 = tpu.matmul %41, %3, %cst_20 {dimension_numbers = #tpu.dot_dimension_numbers<[1], [0], [0], [1], [0, 0, 1, 1], [], []>} : vector<2x32xf32>, vector<32x128xf32>, vector<2x128xf32> -> vector<2x128xf32>
    %46 = arith.addf %44, %45 : vector<2x128xf32>
    %47 = vector.extract_strided_slice %46 {offsets = [0, 0], sizes = [2, 32], strides = [1, 1]} : vector<2x128xf32> to vector<2x32xf32>
    %cst_21 = arith.constant 5.000000e-01 : f32
    %48 = vector.broadcast %cst_21 : f32 to vector<2x32xf32>
    %49 = arith.mulf %48, %47 : vector<2x32xf32>
    %50 = math.tanh %49 : vector<2x32xf32>
    %cst_22 = arith.constant 5.000000e-01 : f32
    %51 = vector.broadcast %cst_22 : f32 to vector<2x32xf32>
    %52 = arith.mulf %51, %50 : vector<2x32xf32>
    %cst_23 = arith.constant 5.000000e-01 : f32
    %53 = vector.broadcast %cst_23 : f32 to vector<2x32xf32>
    %54 = arith.addf %52, %53 : vector<2x32xf32>
    %55 = vector.extract_strided_slice %46 {offsets = [0, 32], sizes = [2, 32], strides = [1, 1]} : vector<2x128xf32> to vector<2x32xf32>
    %cst_24 = arith.constant 5.000000e-01 : f32
    %56 = vector.broadcast %cst_24 : f32 to vector<2x32xf32>
    %57 = arith.mulf %56, %55 : vector<2x32xf32>
    %58 = math.tanh %57 : vector<2x32xf32>
    %cst_25 = arith.constant 5.000000e-01 : f32
    %59 = vector.broadcast %cst_25 : f32 to vector<2x32xf32>
    %60 = arith.mulf %59, %58 : vector<2x32xf32>
    %cst_26 = arith.constant 5.000000e-01 : f32
    %61 = vector.broadcast %cst_26 : f32 to vector<2x32xf32>
    %62 = arith.addf %60, %61 : vector<2x32xf32>
    %63 = vector.extract_strided_slice %46 {offsets = [0, 64], sizes = [2, 32], strides = [1, 1]} : vector<2x128xf32> to vector<2x32xf32>
    %64 = math.tanh %63 : vector<2x32xf32>
    %65 = vector.extract_strided_slice %46 {offsets = [0, 96], sizes = [2, 32], strides = [1, 1]} : vector<2x128xf32> to vector<2x32xf32>
    %cst_27 = arith.constant 5.000000e-01 : f32
    %66 = vector.broadcast %cst_27 : f32 to vector<2x32xf32>
    %67 = arith.mulf %66, %65 : vector<2x32xf32>
    %68 = math.tanh %67 : vector<2x32xf32>
    %cst_28 = arith.constant 5.000000e-01 : f32
    %69 = vector.broadcast %cst_28 : f32 to vector<2x32xf32>
    %70 = arith.mulf %69, %68 : vector<2x32xf32>
    %cst_29 = arith.constant 5.000000e-01 : f32
    %71 = vector.broadcast %cst_29 : f32 to vector<2x32xf32>
    %72 = arith.addf %70, %71 : vector<2x32xf32>
    %73 = arith.mulf %62, %39 : vector<2x32xf32>
    %74 = arith.mulf %54, %64 : vector<2x32xf32>
    %75 = arith.addf %73, %74 : vector<2x32xf32>
    %76 = math.tanh %75 : vector<2x32xf32>
    %77 = arith.mulf %72, %76 : vector<2x32xf32>
    %c2_i32 = arith.constant 2 : i32
    %78 = arith.index_cast %c2_i32 : i32 to index
    %c0_30 = arith.constant 0 : index
    %c0_31 = arith.constant 0 : index
    %79 = vector.load %arg2[%78, %c0_30, %c0_31] : memref<8x2x128xf32, #tpu.memory_space<vmem>>, vector<1x2x128xf32>
    %80 = vector.shape_cast %79 : vector<1x2x128xf32> to vector<2x128xf32>
    %cst_32 = arith.constant dense<0.000000e+00> : vector<2x128xf32>
    %81 = tpu.matmul %77, %3, %cst_32 {dimension_numbers = #tpu.dot_dimension_numbers<[1], [0], [0], [1], [0, 0, 1, 1], [], []>} : vector<2x32xf32>, vector<32x128xf32>, vector<2x128xf32> -> vector<2x128xf32>
    %82 = arith.addf %80, %81 : vector<2x128xf32>
    %83 = vector.extract_strided_slice %82 {offsets = [0, 0], sizes = [2, 32], strides = [1, 1]} : vector<2x128xf32> to vector<2x32xf32>
    %cst_33 = arith.constant 5.000000e-01 : f32
    %84 = vector.broadcast %cst_33 : f32 to vector<2x32xf32>
    %85 = arith.mulf %84, %83 : vector<2x32xf32>
    %86 = math.tanh %85 : vector<2x32xf32>
    %cst_34 = arith.constant 5.000000e-01 : f32
    %87 = vector.broadcast %cst_34 : f32 to vector<2x32xf32>
    %88 = arith.mulf %87, %86 : vector<2x32xf32>
    %cst_35 = arith.constant 5.000000e-01 : f32
    %89 = vector.broadcast %cst_35 : f32 to vector<2x32xf32>
    %90 = arith.addf %88, %89 : vector<2x32xf32>
    %91 = vector.extract_strided_slice %82 {offsets = [0, 32], sizes = [2, 32], strides = [1, 1]} : vector<2x128xf32> to vector<2x32xf32>
    %cst_36 = arith.constant 5.000000e-01 : f32
    %92 = vector.broadcast %cst_36 : f32 to vector<2x32xf32>
    %93 = arith.mulf %92, %91 : vector<2x32xf32>
    %94 = math.tanh %93 : vector<2x32xf32>
    %cst_37 = arith.constant 5.000000e-01 : f32
    %95 = vector.broadcast %cst_37 : f32 to vector<2x32xf32>
    %96 = arith.mulf %95, %94 : vector<2x32xf32>
    %cst_38 = arith.constant 5.000000e-01 : f32
    %97 = vector.broadcast %cst_38 : f32 to vector<2x32xf32>
    %98 = arith.addf %96, %97 : vector<2x32xf32>
    %99 = vector.extract_strided_slice %82 {offsets = [0, 64], sizes = [2, 32], strides = [1, 1]} : vector<2x128xf32> to vector<2x32xf32>
    %100 = math.tanh %99 : vector<2x32xf32>
    %101 = vector.extract_strided_slice %82 {offsets = [0, 96], sizes = [2, 32], strides = [1, 1]} : vector<2x128xf32> to vector<2x32xf32>
    %cst_39 = arith.constant 5.000000e-01 : f32
    %102 = vector.broadcast %cst_39 : f32 to vector<2x32xf32>
    %103 = arith.mulf %102, %101 : vector<2x32xf32>
    %104 = math.tanh %103 : vector<2x32xf32>
    %cst_40 = arith.constant 5.000000e-01 : f32
    %105 = vector.broadcast %cst_40 : f32 to vector<2x32xf32>
    %106 = arith.mulf %105, %104 : vector<2x32xf32>
    %cst_41 = arith.constant 5.000000e-01 : f32
    %107 = vector.broadcast %cst_41 : f32 to vector<2x32xf32>
    %108 = arith.addf %106, %107 : vector<2x32xf32>
    %109 = arith.mulf %98, %75 : vector<2x32xf32>
    %110 = arith.mulf %90, %100 : vector<2x32xf32>
    %111 = arith.addf %109, %110 : vector<2x32xf32>
    %112 = math.tanh %111 : vector<2x32xf32>
    %113 = arith.mulf %108, %112 : vector<2x32xf32>
    %c3_i32 = arith.constant 3 : i32
    %114 = arith.index_cast %c3_i32 : i32 to index
    %c0_42 = arith.constant 0 : index
    %c0_43 = arith.constant 0 : index
    %115 = vector.load %arg2[%114, %c0_42, %c0_43] : memref<8x2x128xf32, #tpu.memory_space<vmem>>, vector<1x2x128xf32>
    %116 = vector.shape_cast %115 : vector<1x2x128xf32> to vector<2x128xf32>
    %cst_44 = arith.constant dense<0.000000e+00> : vector<2x128xf32>
    %117 = tpu.matmul %113, %3, %cst_44 {dimension_numbers = #tpu.dot_dimension_numbers<[1], [0], [0], [1], [0, 0, 1, 1], [], []>} : vector<2x32xf32>, vector<32x128xf32>, vector<2x128xf32> -> vector<2x128xf32>
    %118 = arith.addf %116, %117 : vector<2x128xf32>
    %119 = vector.extract_strided_slice %118 {offsets = [0, 0], sizes = [2, 32], strides = [1, 1]} : vector<2x128xf32> to vector<2x32xf32>
    %cst_45 = arith.constant 5.000000e-01 : f32
    %120 = vector.broadcast %cst_45 : f32 to vector<2x32xf32>
    %121 = arith.mulf %120, %119 : vector<2x32xf32>
    %122 = math.tanh %121 : vector<2x32xf32>
    %cst_46 = arith.constant 5.000000e-01 : f32
    %123 = vector.broadcast %cst_46 : f32 to vector<2x32xf32>
    %124 = arith.mulf %123, %122 : vector<2x32xf32>
    %cst_47 = arith.constant 5.000000e-01 : f32
    %125 = vector.broadcast %cst_47 : f32 to vector<2x32xf32>
    %126 = arith.addf %124, %125 : vector<2x32xf32>
    %127 = vector.extract_strided_slice %118 {offsets = [0, 32], sizes = [2, 32], strides = [1, 1]} : vector<2x128xf32> to vector<2x32xf32>
    %cst_48 = arith.constant 5.000000e-01 : f32
    %128 = vector.broadcast %cst_48 : f32 to vector<2x32xf32>
    %129 = arith.mulf %128, %127 : vector<2x32xf32>
    %130 = math.tanh %129 : vector<2x32xf32>
    %cst_49 = arith.constant 5.000000e-01 : f32
    %131 = vector.broadcast %cst_49 : f32 to vector<2x32xf32>
    %132 = arith.mulf %131, %130 : vector<2x32xf32>
    %cst_50 = arith.constant 5.000000e-01 : f32
    %133 = vector.broadcast %cst_50 : f32 to vector<2x32xf32>
    %134 = arith.addf %132, %133 : vector<2x32xf32>
    %135 = vector.extract_strided_slice %118 {offsets = [0, 64], sizes = [2, 32], strides = [1, 1]} : vector<2x128xf32> to vector<2x32xf32>
    %136 = math.tanh %135 : vector<2x32xf32>
    %137 = vector.extract_strided_slice %118 {offsets = [0, 96], sizes = [2, 32], strides = [1, 1]} : vector<2x128xf32> to vector<2x32xf32>
    %cst_51 = arith.constant 5.000000e-01 : f32
    %138 = vector.broadcast %cst_51 : f32 to vector<2x32xf32>
    %139 = arith.mulf %138, %137 : vector<2x32xf32>
    %140 = math.tanh %139 : vector<2x32xf32>
    %cst_52 = arith.constant 5.000000e-01 : f32
    %141 = vector.broadcast %cst_52 : f32 to vector<2x32xf32>
    %142 = arith.mulf %141, %140 : vector<2x32xf32>
    %cst_53 = arith.constant 5.000000e-01 : f32
    %143 = vector.broadcast %cst_53 : f32 to vector<2x32xf32>
    %144 = arith.addf %142, %143 : vector<2x32xf32>
    %145 = arith.mulf %134, %111 : vector<2x32xf32>
    %146 = arith.mulf %126, %136 : vector<2x32xf32>
    %147 = arith.addf %145, %146 : vector<2x32xf32>
    %148 = math.tanh %147 : vector<2x32xf32>
    %149 = arith.mulf %144, %148 : vector<2x32xf32>
    %c4_i32 = arith.constant 4 : i32
    %150 = arith.index_cast %c4_i32 : i32 to index
    %c0_54 = arith.constant 0 : index
    %c0_55 = arith.constant 0 : index
    %151 = vector.load %arg2[%150, %c0_54, %c0_55] : memref<8x2x128xf32, #tpu.memory_space<vmem>>, vector<1x2x128xf32>
    %152 = vector.shape_cast %151 : vector<1x2x128xf32> to vector<2x128xf32>
    %cst_56 = arith.constant dense<0.000000e+00> : vector<2x128xf32>
    %153 = tpu.matmul %149, %3, %cst_56 {dimension_numbers = #tpu.dot_dimension_numbers<[1], [0], [0], [1], [0, 0, 1, 1], [], []>} : vector<2x32xf32>, vector<32x128xf32>, vector<2x128xf32> -> vector<2x128xf32>
    %154 = arith.addf %152, %153 : vector<2x128xf32>
    %155 = vector.extract_strided_slice %154 {offsets = [0, 0], sizes = [2, 32], strides = [1, 1]} : vector<2x128xf32> to vector<2x32xf32>
    %cst_57 = arith.constant 5.000000e-01 : f32
    %156 = vector.broadcast %cst_57 : f32 to vector<2x32xf32>
    %157 = arith.mulf %156, %155 : vector<2x32xf32>
    %158 = math.tanh %157 : vector<2x32xf32>
    %cst_58 = arith.constant 5.000000e-01 : f32
    %159 = vector.broadcast %cst_58 : f32 to vector<2x32xf32>
    %160 = arith.mulf %159, %158 : vector<2x32xf32>
    %cst_59 = arith.constant 5.000000e-01 : f32
    %161 = vector.broadcast %cst_59 : f32 to vector<2x32xf32>
    %162 = arith.addf %160, %161 : vector<2x32xf32>
    %163 = vector.extract_strided_slice %154 {offsets = [0, 32], sizes = [2, 32], strides = [1, 1]} : vector<2x128xf32> to vector<2x32xf32>
    %cst_60 = arith.constant 5.000000e-01 : f32
    %164 = vector.broadcast %cst_60 : f32 to vector<2x32xf32>
    %165 = arith.mulf %164, %163 : vector<2x32xf32>
    %166 = math.tanh %165 : vector<2x32xf32>
    %cst_61 = arith.constant 5.000000e-01 : f32
    %167 = vector.broadcast %cst_61 : f32 to vector<2x32xf32>
    %168 = arith.mulf %167, %166 : vector<2x32xf32>
    %cst_62 = arith.constant 5.000000e-01 : f32
    %169 = vector.broadcast %cst_62 : f32 to vector<2x32xf32>
    %170 = arith.addf %168, %169 : vector<2x32xf32>
    %171 = vector.extract_strided_slice %154 {offsets = [0, 64], sizes = [2, 32], strides = [1, 1]} : vector<2x128xf32> to vector<2x32xf32>
    %172 = math.tanh %171 : vector<2x32xf32>
    %173 = vector.extract_strided_slice %154 {offsets = [0, 96], sizes = [2, 32], strides = [1, 1]} : vector<2x128xf32> to vector<2x32xf32>
    %cst_63 = arith.constant 5.000000e-01 : f32
    %174 = vector.broadcast %cst_63 : f32 to vector<2x32xf32>
    %175 = arith.mulf %174, %173 : vector<2x32xf32>
    %176 = math.tanh %175 : vector<2x32xf32>
    %cst_64 = arith.constant 5.000000e-01 : f32
    %177 = vector.broadcast %cst_64 : f32 to vector<2x32xf32>
    %178 = arith.mulf %177, %176 : vector<2x32xf32>
    %cst_65 = arith.constant 5.000000e-01 : f32
    %179 = vector.broadcast %cst_65 : f32 to vector<2x32xf32>
    %180 = arith.addf %178, %179 : vector<2x32xf32>
    %181 = arith.mulf %170, %147 : vector<2x32xf32>
    %182 = arith.mulf %162, %172 : vector<2x32xf32>
    %183 = arith.addf %181, %182 : vector<2x32xf32>
    %184 = math.tanh %183 : vector<2x32xf32>
    %185 = arith.mulf %180, %184 : vector<2x32xf32>
    %c5_i32 = arith.constant 5 : i32
    %186 = arith.index_cast %c5_i32 : i32 to index
    %c0_66 = arith.constant 0 : index
    %c0_67 = arith.constant 0 : index
    %187 = vector.load %arg2[%186, %c0_66, %c0_67] : memref<8x2x128xf32, #tpu.memory_space<vmem>>, vector<1x2x128xf32>
    %188 = vector.shape_cast %187 : vector<1x2x128xf32> to vector<2x128xf32>
    %cst_68 = arith.constant dense<0.000000e+00> : vector<2x128xf32>
    %189 = tpu.matmul %185, %3, %cst_68 {dimension_numbers = #tpu.dot_dimension_numbers<[1], [0], [0], [1], [0, 0, 1, 1], [], []>} : vector<2x32xf32>, vector<32x128xf32>, vector<2x128xf32> -> vector<2x128xf32>
    %190 = arith.addf %188, %189 : vector<2x128xf32>
    %191 = vector.extract_strided_slice %190 {offsets = [0, 0], sizes = [2, 32], strides = [1, 1]} : vector<2x128xf32> to vector<2x32xf32>
    %cst_69 = arith.constant 5.000000e-01 : f32
    %192 = vector.broadcast %cst_69 : f32 to vector<2x32xf32>
    %193 = arith.mulf %192, %191 : vector<2x32xf32>
    %194 = math.tanh %193 : vector<2x32xf32>
    %cst_70 = arith.constant 5.000000e-01 : f32
    %195 = vector.broadcast %cst_70 : f32 to vector<2x32xf32>
    %196 = arith.mulf %195, %194 : vector<2x32xf32>
    %cst_71 = arith.constant 5.000000e-01 : f32
    %197 = vector.broadcast %cst_71 : f32 to vector<2x32xf32>
    %198 = arith.addf %196, %197 : vector<2x32xf32>
    %199 = vector.extract_strided_slice %190 {offsets = [0, 32], sizes = [2, 32], strides = [1, 1]} : vector<2x128xf32> to vector<2x32xf32>
    %cst_72 = arith.constant 5.000000e-01 : f32
    %200 = vector.broadcast %cst_72 : f32 to vector<2x32xf32>
    %201 = arith.mulf %200, %199 : vector<2x32xf32>
    %202 = math.tanh %201 : vector<2x32xf32>
    %cst_73 = arith.constant 5.000000e-01 : f32
    %203 = vector.broadcast %cst_73 : f32 to vector<2x32xf32>
    %204 = arith.mulf %203, %202 : vector<2x32xf32>
    %cst_74 = arith.constant 5.000000e-01 : f32
    %205 = vector.broadcast %cst_74 : f32 to vector<2x32xf32>
    %206 = arith.addf %204, %205 : vector<2x32xf32>
    %207 = vector.extract_strided_slice %190 {offsets = [0, 64], sizes = [2, 32], strides = [1, 1]} : vector<2x128xf32> to vector<2x32xf32>
    %208 = math.tanh %207 : vector<2x32xf32>
    %209 = vector.extract_strided_slice %190 {offsets = [0, 96], sizes = [2, 32], strides = [1, 1]} : vector<2x128xf32> to vector<2x32xf32>
    %cst_75 = arith.constant 5.000000e-01 : f32
    %210 = vector.broadcast %cst_75 : f32 to vector<2x32xf32>
    %211 = arith.mulf %210, %209 : vector<2x32xf32>
    %212 = math.tanh %211 : vector<2x32xf32>
    %cst_76 = arith.constant 5.000000e-01 : f32
    %213 = vector.broadcast %cst_76 : f32 to vector<2x32xf32>
    %214 = arith.mulf %213, %212 : vector<2x32xf32>
    %cst_77 = arith.constant 5.000000e-01 : f32
    %215 = vector.broadcast %cst_77 : f32 to vector<2x32xf32>
    %216 = arith.addf %214, %215 : vector<2x32xf32>
    %217 = arith.mulf %206, %183 : vector<2x32xf32>
    %218 = arith.mulf %198, %208 : vector<2x32xf32>
    %219 = arith.addf %217, %218 : vector<2x32xf32>
    %220 = math.tanh %219 : vector<2x32xf32>
    %221 = arith.mulf %216, %220 : vector<2x32xf32>
    %c6_i32 = arith.constant 6 : i32
    %222 = arith.index_cast %c6_i32 : i32 to index
    %c0_78 = arith.constant 0 : index
    %c0_79 = arith.constant 0 : index
    %223 = vector.load %arg2[%222, %c0_78, %c0_79] : memref<8x2x128xf32, #tpu.memory_space<vmem>>, vector<1x2x128xf32>
    %224 = vector.shape_cast %223 : vector<1x2x128xf32> to vector<2x128xf32>
    %cst_80 = arith.constant dense<0.000000e+00> : vector<2x128xf32>
    %225 = tpu.matmul %221, %3, %cst_80 {dimension_numbers = #tpu.dot_dimension_numbers<[1], [0], [0], [1], [0, 0, 1, 1], [], []>} : vector<2x32xf32>, vector<32x128xf32>, vector<2x128xf32> -> vector<2x128xf32>
    %226 = arith.addf %224, %225 : vector<2x128xf32>
    %227 = vector.extract_strided_slice %226 {offsets = [0, 0], sizes = [2, 32], strides = [1, 1]} : vector<2x128xf32> to vector<2x32xf32>
    %cst_81 = arith.constant 5.000000e-01 : f32
    %228 = vector.broadcast %cst_81 : f32 to vector<2x32xf32>
    %229 = arith.mulf %228, %227 : vector<2x32xf32>
    %230 = math.tanh %229 : vector<2x32xf32>
    %cst_82 = arith.constant 5.000000e-01 : f32
    %231 = vector.broadcast %cst_82 : f32 to vector<2x32xf32>
    %232 = arith.mulf %231, %230 : vector<2x32xf32>
    %cst_83 = arith.constant 5.000000e-01 : f32
    %233 = vector.broadcast %cst_83 : f32 to vector<2x32xf32>
    %234 = arith.addf %232, %233 : vector<2x32xf32>
    %235 = vector.extract_strided_slice %226 {offsets = [0, 32], sizes = [2, 32], strides = [1, 1]} : vector<2x128xf32> to vector<2x32xf32>
    %cst_84 = arith.constant 5.000000e-01 : f32
    %236 = vector.broadcast %cst_84 : f32 to vector<2x32xf32>
    %237 = arith.mulf %236, %235 : vector<2x32xf32>
    %238 = math.tanh %237 : vector<2x32xf32>
    %cst_85 = arith.constant 5.000000e-01 : f32
    %239 = vector.broadcast %cst_85 : f32 to vector<2x32xf32>
    %240 = arith.mulf %239, %238 : vector<2x32xf32>
    %cst_86 = arith.constant 5.000000e-01 : f32
    %241 = vector.broadcast %cst_86 : f32 to vector<2x32xf32>
    %242 = arith.addf %240, %241 : vector<2x32xf32>
    %243 = vector.extract_strided_slice %226 {offsets = [0, 64], sizes = [2, 32], strides = [1, 1]} : vector<2x128xf32> to vector<2x32xf32>
    %244 = math.tanh %243 : vector<2x32xf32>
    %245 = vector.extract_strided_slice %226 {offsets = [0, 96], sizes = [2, 32], strides = [1, 1]} : vector<2x128xf32> to vector<2x32xf32>
    %cst_87 = arith.constant 5.000000e-01 : f32
    %246 = vector.broadcast %cst_87 : f32 to vector<2x32xf32>
    %247 = arith.mulf %246, %245 : vector<2x32xf32>
    %248 = math.tanh %247 : vector<2x32xf32>
    %cst_88 = arith.constant 5.000000e-01 : f32
    %249 = vector.broadcast %cst_88 : f32 to vector<2x32xf32>
    %250 = arith.mulf %249, %248 : vector<2x32xf32>
    %cst_89 = arith.constant 5.000000e-01 : f32
    %251 = vector.broadcast %cst_89 : f32 to vector<2x32xf32>
    %252 = arith.addf %250, %251 : vector<2x32xf32>
    %253 = arith.mulf %242, %219 : vector<2x32xf32>
    %254 = arith.mulf %234, %244 : vector<2x32xf32>
    %255 = arith.addf %253, %254 : vector<2x32xf32>
    %256 = math.tanh %255 : vector<2x32xf32>
    %257 = arith.mulf %252, %256 : vector<2x32xf32>
    %c7_i32 = arith.constant 7 : i32
    %258 = arith.index_cast %c7_i32 : i32 to index
    %c0_90 = arith.constant 0 : index
    %c0_91 = arith.constant 0 : index
    %259 = vector.load %arg2[%258, %c0_90, %c0_91] : memref<8x2x128xf32, #tpu.memory_space<vmem>>, vector<1x2x128xf32>
    %260 = vector.shape_cast %259 : vector<1x2x128xf32> to vector<2x128xf32>
    %cst_92 = arith.constant dense<0.000000e+00> : vector<2x128xf32>
    %261 = tpu.matmul %257, %3, %cst_92 {dimension_numbers = #tpu.dot_dimension_numbers<[1], [0], [0], [1], [0, 0, 1, 1], [], []>} : vector<2x32xf32>, vector<32x128xf32>, vector<2x128xf32> -> vector<2x128xf32>
    %262 = arith.addf %260, %261 : vector<2x128xf32>
    %263 = vector.extract_strided_slice %262 {offsets = [0, 0], sizes = [2, 32], strides = [1, 1]} : vector<2x128xf32> to vector<2x32xf32>
    %cst_93 = arith.constant 5.000000e-01 : f32
    %264 = vector.broadcast %cst_93 : f32 to vector<2x32xf32>
    %265 = arith.mulf %264, %263 : vector<2x32xf32>
    %266 = math.tanh %265 : vector<2x32xf32>
    %cst_94 = arith.constant 5.000000e-01 : f32
    %267 = vector.broadcast %cst_94 : f32 to vector<2x32xf32>
    %268 = arith.mulf %267, %266 : vector<2x32xf32>
    %cst_95 = arith.constant 5.000000e-01 : f32
    %269 = vector.broadcast %cst_95 : f32 to vector<2x32xf32>
    %270 = arith.addf %268, %269 : vector<2x32xf32>
    %271 = vector.extract_strided_slice %262 {offsets = [0, 32], sizes = [2, 32], strides = [1, 1]} : vector<2x128xf32> to vector<2x32xf32>
    %cst_96 = arith.constant 5.000000e-01 : f32
    %272 = vector.broadcast %cst_96 : f32 to vector<2x32xf32>
    %273 = arith.mulf %272, %271 : vector<2x32xf32>
    %274 = math.tanh %273 : vector<2x32xf32>
    %cst_97 = arith.constant 5.000000e-01 : f32
    %275 = vector.broadcast %cst_97 : f32 to vector<2x32xf32>
    %276 = arith.mulf %275, %274 : vector<2x32xf32>
    %cst_98 = arith.constant 5.000000e-01 : f32
    %277 = vector.broadcast %cst_98 : f32 to vector<2x32xf32>
    %278 = arith.addf %276, %277 : vector<2x32xf32>
    %279 = vector.extract_strided_slice %262 {offsets = [0, 64], sizes = [2, 32], strides = [1, 1]} : vector<2x128xf32> to vector<2x32xf32>
    %280 = math.tanh %279 : vector<2x32xf32>
    %281 = vector.extract_strided_slice %262 {offsets = [0, 96], sizes = [2, 32], strides = [1, 1]} : vector<2x128xf32> to vector<2x32xf32>
    %cst_99 = arith.constant 5.000000e-01 : f32
    %282 = vector.broadcast %cst_99 : f32 to vector<2x32xf32>
    %283 = arith.mulf %282, %281 : vector<2x32xf32>
    %284 = math.tanh %283 : vector<2x32xf32>
    %cst_100 = arith.constant 5.000000e-01 : f32
    %285 = vector.broadcast %cst_100 : f32 to vector<2x32xf32>
    %286 = arith.mulf %285, %284 : vector<2x32xf32>
    %cst_101 = arith.constant 5.000000e-01 : f32
    %287 = vector.broadcast %cst_101 : f32 to vector<2x32xf32>
    %288 = arith.addf %286, %287 : vector<2x32xf32>
    %289 = arith.mulf %278, %255 : vector<2x32xf32>
    %290 = arith.mulf %270, %280 : vector<2x32xf32>
    %291 = arith.addf %289, %290 : vector<2x32xf32>
    %292 = math.tanh %291 : vector<2x32xf32>
    %293 = arith.mulf %288, %292 : vector<2x32xf32>
    %c8_i32 = arith.constant 8 : i32
    %c0_102 = arith.constant 0 : index
    %c0_103 = arith.constant 0 : index
    %294 = vector.load %arg5[%c0_102, %c0_103] : memref<2x32xf32, #tpu.memory_space<vmem>>, vector<2x32xf32>
    tpu.vector_store %arg5[%c0_102, %c0_103], %293 {strides = array<i32>} : memref<2x32xf32, #tpu.memory_space<vmem>>, vector<2x32xf32>,
    %c0_104 = arith.constant 0 : index
    %c0_105 = arith.constant 0 : index
    %295 = vector.load %arg6[%c0_104, %c0_105] : memref<2x32xf32, #tpu.memory_space<vmem>>, vector<2x32xf32>
    tpu.vector_store %arg6[%c0_104, %c0_105], %291 {strides = array<i32>} : memref<2x32xf32, #tpu.memory_space<vmem>>, vector<2x32xf32>,
    %c0_i32_106 = arith.constant 0 : i32
    %296 = arith.cmpi eq, %arg1, %c0_i32_106 : i32
    %297 = arith.extui %296 : i1 to i32
    %c0_i32_107 = arith.constant 0 : i32
    %298 = arith.cmpi ne, %297, %c0_i32_107 : i32
    scf.if %298 {
      %c0_108 = arith.constant 0 : index
      %c0_109 = arith.constant 0 : index
      %299 = vector.load %arg4[%c0_108, %c0_109] : memref<2x32xf32, #tpu.memory_space<vmem>>, vector<2x32xf32>
      tpu.vector_store %arg4[%c0_108, %c0_109], %293 {strides = array<i32>} : memref<2x32xf32, #tpu.memory_space<vmem>>, vector<2x32xf32>,
    } else {
    }
    return
  }
  func.func @transform_0(%arg0: i32, %arg1: i32) -> (i32, i32, i32) {
    %c0_i32 = arith.constant 0 : i32
    %c0_i32_0 = arith.constant 0 : i32
    return %arg1, %arg0, %c0_i32 : i32, i32, i32
  }
  func.func @transform_1(%arg0: i32, %arg1: i32) -> (i32, i32) {
    %c0_i32 = arith.constant 0 : i32
    %c0_i32_0 = arith.constant 0 : i32
    %c0_i32_1 = arith.constant 0 : i32
    return %c0_i32, %c0_i32_0 : i32, i32
  }
  func.func @transform_2(%arg0: i32, %arg1: i32) -> (i32, i32) {
    %c0_i32 = arith.constant 0 : i32
    %c0_i32_0 = arith.constant 0 : i32
    return %arg0, %c0_i32 : i32, i32
  }
}

</mosaic_0001>

<bundles_post_ra>
// kernel: rnn_forward.1
= control target key start
LH: loop header
LB: loop body
LE: loop exit
PB: predicated region body
PF: predicated region fallthrough
CT: control target
= control target key end

     0   :  { %vm15_vm0 = vcmask 254976   ;;  %v1041_v0 = vmov 0.0   ;;  %vm1042_vm1 = vmmov 0   ;;  %vm25_vm2 = vcmask 261120   ;;  %s1043_s18 = smov 64   ;;  %s1044_s19 = smov 32   ;;  %s1236_s1 = inlined_call_operand.vmem [shape: f32[32,128], index: 1, kind: input, shape index: {}]   ;;  %s1237_s0 = inlined_call_operand.vmem [shape: f32[8,2,128], index: 0, kind: input, shape index: {}]   ;;  %s1238_s2 = inlined_call_operand.vmem [shape: f32[2,32], index: 2, kind: output, shape index: {}]  }
   0x1   :  { %900 = vmatprep.subr.mxu0 %v1041_v0  ;;  %v1065_v1 = vld [vmem:[%s1236_s1 + $0x18] sm:$0xff]  ;;  %v1070_v2 = vld [vmem:[%s1236_s1 + $0x10] sm:$0xff]  ;;  %908 = vmatprep.mubr.msk.f32.mxu0 %vm1042_vm1, %v1041_v0  ;;  %16 = vst.msk [vmem:[#allocation2] sm:$0x3] %vm15_vm0, %v1041_v0  ;;  %17 = vst.msk [vmem:[#allocation3] sm:$0x3] %vm15_vm0, %v1041_v0 }
   0x2   :  { %901 = vmatpush3.msra.mxu0 %v1065_v1  ;;  %911 = vmatprep.subr.mxu1 %v1041_v0  ;;  %v1084_v3 = vld [vmem:[%s1236_s1 + $0x8] sm:$0xff]  ;;  %v1093_v4 = vld [vmem:[%s1236_s1] sm:$0xff] }
   0x3   :  { %902 = vmatprep.subr.mxu0 %v1041_v0  ;;  %912 = vmatpush3.msra.mxu1 %v1065_v1  ;;  %v24_v6 = vld [vmem:[%s1237_s0] sm:$0x3]  ;;  %v846_v26 = vld [vmem:[%s1237_s0 + $0x2] sm:$0x3]  ;;  %v848_v44 = vld [vmem:[%s1237_s0 + $0x4] sm:$0x3] }
   0x4   :  { %903 = vmatpush3.msra.mxu0 %v1070_v2  ;;  %913 = vmatprep.subr.mxu1 %v1041_v0  ;;  %v850_v62 = vld [vmem:[%s1237_s0 + $0x6] sm:$0x3] }
   0x5   :  { %904 = vmatprep.subr.mxu0 %v1041_v0  ;;  %914 = vmatpush3.msra.mxu1 %v1070_v2 }
   0x6   :  { %905 = vmatpush3.msra.mxu0 %v1084_v3  ;;  %915 = vmatprep.subr.mxu1 %v1041_v0 }
   0x7   :  { %906 = vmatprep.subr.mxu0 %v1041_v0  ;;  %916 = vmatpush3.msra.mxu1 %v1084_v3 }
   0x8   :  { %907 = vmatpush3.msra.mxu0 %v1093_v4  ;;  %v22_v5 = vld [vmem:[#allocation2] sm:$0x3]  ;;  %917 = vmatprep.subr.mxu1 %v1041_v0  ;;  %v23_v11 = vld [vmem:[#allocation3] sm:$0x3] }
   0x9   :  { %909 = vmatmul.mubr.msk.f32.vlgmr.msra.gmra.mxu0 %vm25_vm2, %v22_v5  ;;  %918 = vmatpush3.msra.mxu1 %v1093_v4 }
   0xa   :  { %919 = vmatprep.mubr.msk.f32.mxu1 %vm1042_vm1, %v1041_v0  ;;  %922 = vmatprep.subr.mxu0 %v1041_v0 }
   0xb   :  { %923 = vmatpush3.msra.mxu0 %v1065_v1  ;;  %930 = vmatprep.mubr.msk.f32.mxu0 %vm1042_vm1, %v1041_v0 }
   0xc   :  { %924 = vmatprep.subr.mxu0 %v1041_v0  ;;  %933 = vmatprep.subr.mxu1 %v1041_v0 }
   0xd   :  { %925 = vmatpush3.msra.mxu0 %v1070_v2 }
   0xe   :  { %926 = vmatprep.subr.mxu0 %v1041_v0 }
   0xf   :  { %927 = vmatpush3.msra.mxu0 %v1084_v3 }
  0x10   :  { %928 = vmatprep.subr.mxu0 %v1041_v0 }
  0x11   :  { %929 = vmatpush3.msra.mxu0 %v1093_v4 }
  0x12   :  { %944 = vmatprep.subr.mxu0 %v1041_v0 }
  0xc9   :  { %v95_v7 = vpop.f32.mrf.mxu0 }
  0xca   :  { %v99_v8 = vadd.f32 %v95_v7, %v24_v6 }
  0xcb   :  { %v910_v9 = vpop.f32.mrf.mxu0 }
  0xcc   :  { %993 = vtanh.f32 %v99_v8  ;;  %v100_v12 = vmul.f32 0.5, %v99_v8 }
  0xce   :  { %995 = vtanh.f32 %v100_v12 }
  0xd9   :  { %v994_v10 = vpop.eup %993 }
  0xda   :  { %111 = vrot.lane.b32.xlu0 %v994_v10, %s1043_s18 }
  0xdb   :  { %v996_v13 = vpop.eup %995 }
  0xdc   :  { %v102_v14 = vmul.f32 0.5, %v996_v13 }
  0xde   :  { %106 = vrot.lane.b32.xlu0 %v23_v11, %s1044_s19  ;;  %v103_v15 = vadd.f32 0.5, %v102_v14 }
 0x14c   :  { %v112_v16 = vpop.permute.xlu0 %111 }
 0x14d   :  { %v114_v17 = vmul.f32 %v112_v16, %v103_v15 }
 0x14f   :  { %116 = vrot.lane.b32.xlu1 %v114_v17, %s1044_s19 }
 0x150   :  { %v107_v18 = vpop.permute.xlu0 %106 }
 0x151   :  { %v109_v19 = vmul.f32 %v107_v18, %v103_v15 }
 0x1c1   :  { %v117_v20 = vpop.permute.xlu1 %116 }
 0x1c2   :  { %v119_v21 = vadd.f32 %v117_v20, %v109_v19 }
 0x1c4   :  { %997 = vtanh.f32 %v119_v21 }
 0x1d1   :  { %v998_v22 = vpop.eup %997 }
 0x1d2   :  { %122 = vrot.lane.b32.xlu1 %v998_v22, %s1043_s18 }
 0x244   :  { %v123_v23 = vpop.permute.xlu1 %122 }
 0x245   :  { %v125_v24 = vmul.f32 %v123_v23, %v103_v15 }
 0x247   :  { %129 = vrot.lane.b32.xlu0 %v125_v24, %s1044_s19 }
 0x2b9   :  { %v130_v25 = vpop.permute.xlu0 %129 }
 0x2ba   :  { %920 = vmatmul.mubr.msk.f32.vlgmr.msra.gmra.mxu1 %vm25_vm2, %v130_v25 }
 0x2bb   :  { %934 = vmatpush3.msra.mxu1 %v1065_v1  ;;  %941 = vmatprep.mubr.msk.f32.mxu1 %vm1042_vm1, %v1041_v0 }
 0x2bc   :  { %935 = vmatprep.subr.mxu1 %v1041_v0 }
 0x2bd   :  { %936 = vmatpush3.msra.mxu1 %v1070_v2 }
 0x2be   :  { %937 = vmatprep.subr.mxu1 %v1041_v0 }
 0x2bf   :  { %938 = vmatpush3.msra.mxu1 %v1084_v3 }
 0x2c0   :  { %939 = vmatprep.subr.mxu1 %v1041_v0 }
 0x2c1   :  { %940 = vmatpush3.msra.mxu1 %v1093_v4 }
 0x2c2   :  { %955 = vmatprep.subr.mxu1 %v1041_v0 }
 0x37a   :  { %v199_v27 = vpop.f32.mrf.mxu1 }
 0x37b   :  { %v203_v28 = vadd.f32 %v846_v26, %v199_v27 }
 0x37c   :  { %v921_v29 = vpop.f32.mrf.mxu1 }
 0x37d   :  { %999 = vtanh.f32 %v203_v28  ;;  %v204_v31 = vmul.f32 0.5, %v203_v28 }
 0x37f   :  { %1001 = vtanh.f32 %v204_v31 }
 0x38a   :  { %v1000_v30 = vpop.eup %999 }
 0x38b   :  { %211 = vrot.lane.b32.xlu1 %v1000_v30, %s1043_s18 }
 0x38c   :  { %v1002_v32 = vpop.eup %1001 }
 0x38d   :  { %v206_v33 = vmul.f32 0.5, %v1002_v32 }
 0x38f   :  { %v207_v34 = vadd.f32 0.5, %v206_v33 }
 0x391   :  { %v209_v37 = vmul.f32 %v207_v34, %v119_v21  ;;  %v852_v21 = vld [vmem:[%s1237_s0 + $0x8] sm:$0x3] }
 0x3fd   :  { %v212_v35 = vpop.permute.xlu1 %211 }
 0x3fe   :  { %v214_v36 = vmul.f32 %v212_v35, %v207_v34 }
 0x400   :  { %216 = vrot.lane.b32.xlu0 %v214_v36, %s1044_s19 }
 0x472   :  { %v217_v38 = vpop.permute.xlu0 %216 }
 0x473   :  { %v219_v39 = vadd.f32 %v217_v38, %v209_v37 }
 0x475   :  { %1003 = vtanh.f32 %v219_v39 }
 0x482   :  { %v1004_v40 = vpop.eup %1003 }
 0x483   :  { %222 = vrot.lane.b32.xlu1 %v1004_v40, %s1043_s18 }
 0x4f5   :  { %v223_v41 = vpop.permute.xlu1 %222 }
 0x4f6   :  { %v225_v42 = vmul.f32 %v223_v41, %v207_v34 }
 0x4f8   :  { %229 = vrot.lane.b32.xlu0 %v225_v42, %s1044_s19 }
 0x56a   :  { %v230_v43 = vpop.permute.xlu0 %229 }
 0x56b   :  { %931 = vmatmul.mubr.msk.f32.vlgmr.msra.gmra.mxu0 %vm25_vm2, %v230_v43 }
 0x56c   :  { %945 = vmatpush3.msra.mxu0 %v1065_v1  ;;  %952 = vmatprep.mubr.msk.f32.mxu0 %vm1042_vm1, %v1041_v0 }
 0x56d   :  { %946 = vmatprep.subr.mxu0 %v1041_v0 }
 0x56e   :  { %947 = vmatpush3.msra.mxu0 %v1070_v2 }
 0x56f   :  { %948 = vmatprep.subr.mxu0 %v1041_v0 }
 0x570   :  { %949 = vmatpush3.msra.mxu0 %v1084_v3 }
 0x571   :  { %950 = vmatprep.subr.mxu0 %v1041_v0 }
 0x572   :  { %951 = vmatpush3.msra.mxu0 %v1093_v4 }
 0x573   :  { %966 = vmatprep.subr.mxu0 %v1041_v0 }
 0x62b   :  { %v299_v45 = vpop.f32.mrf.mxu0 }
 0x62c   :  { %v303_v46 = vadd.f32 %v848_v44, %v299_v45 }
 0x62d   :  { %v932_v47 = vpop.f32.mrf.mxu0 }
 0x62e   :  { %1005 = vtanh.f32 %v303_v46  ;;  %v304_v49 = vmul.f32 0.5, %v303_v46 }
 0x630   :  { %1007 = vtanh.f32 %v304_v49 }
 0x63b   :  { %v1006_v48 = vpop.eup %1005 }
 0x63c   :  { %311 = vrot.lane.b32.xlu1 %v1006_v48, %s1043_s18 }
 0x63d   :  { %v1008_v50 = vpop.eup %1007 }
 0x63e   :  { %v306_v51 = vmul.f32 0.5, %v1008_v50 }
 0x640   :  { %v307_v52 = vadd.f32 0.5, %v306_v51 }
 0x642   :  { %v309_v55 = vmul.f32 %v307_v52, %v219_v39  ;;  %v854_v39 = vld [vmem:[%s1237_s0 + $0xa] sm:$0x3] }
 0x6ae   :  { %v312_v53 = vpop.permute.xlu1 %311 }
 0x6af   :  { %v314_v54 = vmul.f32 %v312_v53, %v307_v52 }
 0x6b1   :  { %316 = vrot.lane.b32.xlu0 %v314_v54, %s1044_s19 }
 0x723   :  { %v317_v56 = vpop.permute.xlu0 %316 }
 0x724   :  { %v319_v57 = vadd.f32 %v317_v56, %v309_v55 }
 0x726   :  { %1009 = vtanh.f32 %v319_v57 }
 0x733   :  { %v1010_v58 = vpop.eup %1009 }
 0x734   :  { %322 = vrot.lane.b32.xlu1 %v1010_v58, %s1043_s18 }
 0x7a6   :  { %v323_v59 = vpop.permute.xlu1 %322 }
 0x7a7   :  { %v325_v60 = vmul.f32 %v323_v59, %v307_v52  ;;  %v856_v52 = vld [vmem:[%s1237_s0 + $0xc] sm:$0x3] }
 0x7a9   :  { %329 = vrot.lane.b32.xlu0 %v325_v60, %s1044_s19 }
 0x81b   :  { %v330_v61 = vpop.permute.xlu0 %329 }
 0x81c   :  { %942 = vmatmul.mubr.msk.f32.vlgmr.msra.gmra.mxu1 %vm25_vm2, %v330_v61 }
 0x81d   :  { %956 = vmatpush3.msra.mxu1 %v1065_v1  ;;  %963 = vmatprep.mubr.msk.f32.mxu1 %vm1042_vm1, %v1041_v0 }
 0x81e   :  { %957 = vmatprep.subr.mxu1 %v1041_v0 }
 0x81f   :  { %958 = vmatpush3.msra.mxu1 %v1070_v2 }
 0x820   :  { %959 = vmatprep.subr.mxu1 %v1041_v0 }
 0x821   :  { %960 = vmatpush3.msra.mxu1 %v1084_v3 }
 0x822   :  { %961 = vmatprep.subr.mxu1 %v1041_v0 }
 0x823   :  { %962 = vmatpush3.msra.mxu1 %v1093_v4 }
 0x824   :  { %977 = vmatprep.subr.mxu1 %v1041_v0 }
 0x8dc   :  { %v399_v63 = vpop.f32.mrf.mxu1 }
 0x8dd   :  { %v403_v5 = vadd.f32 %v850_v62, %v399_v63 }
 0x8de   :  { %v943_v6 = vpop.f32.mrf.mxu1 }
 0x8df   :  { %1011 = vtanh.f32 %v403_v5  ;;  %v404_v8 = vmul.f32 0.5, %v403_v5 }
 0x8e1   :  { %1013 = vtanh.f32 %v404_v8 }
 0x8ec   :  { %v1012_v7 = vpop.eup %1011 }
 0x8ed   :  { %411 = vrot.lane.b32.xlu1 %v1012_v7, %s1043_s18 }
 0x8ee   :  { %v1014_v9 = vpop.eup %1013 }
 0x8ef   :  { %v406_v10 = vmul.f32 0.5, %v1014_v9 }
 0x8f1   :  { %v407_v11 = vadd.f32 0.5, %v406_v10 }
 0x8f3   :  { %v409_v14 = vmul.f32 %v407_v11, %v319_v57 }
 0x95f   :  { %v412_v12 = vpop.permute.xlu1 %411 }
 0x960   :  { %v414_v13 = vmul.f32 %v412_v12, %v407_v11 }
 0x962   :  { %416 = vrot.lane.b32.xlu0 %v414_v13, %s1044_s19 }
 0x9d4   :  { %v417_v15 = vpop.permute.xlu0 %416 }
 0x9d5   :  { %v419_v16 = vadd.f32 %v417_v15, %v409_v14 }
 0x9d7   :  { %1015 = vtanh.f32 %v419_v16 }
 0x9e4   :  { %v1016_v17 = vpop.eup %1015 }
 0x9e5   :  { %422 = vrot.lane.b32.xlu1 %v1016_v17, %s1043_s18 }
 0xa57   :  { %v423_v18 = vpop.permute.xlu1 %422 }
 0xa58   :  { %v425_v19 = vmul.f32 %v423_v18, %v407_v11  ;;  %v858_v11 = vld [vmem:[%s1237_s0 + $0xe] sm:$0x3]  ;;  %s1045_s0 = smov 96  }
 0xa5a   :  { %429 = vrot.lane.b32.xlu0 %v425_v19, %s1044_s19 }
 0xacc   :  { %v430_v20 = vpop.permute.xlu0 %429 }
 0xacd   :  { %953 = vmatmul.mubr.msk.f32.vlgmr.msra.gmra.mxu0 %vm25_vm2, %v430_v20 }
 0xace   :  { %967 = vmatpush3.msra.mxu0 %v1065_v1  ;;  %974 = vmatprep.mubr.msk.f32.mxu0 %vm1042_vm1, %v1041_v0 }
 0xacf   :  { %968 = vmatprep.subr.mxu0 %v1041_v0 }
 0xad0   :  { %969 = vmatpush3.msra.mxu0 %v1070_v2 }
 0xad1   :  { %970 = vmatprep.subr.mxu0 %v1041_v0 }
 0xad2   :  { %971 = vmatpush3.msra.mxu0 %v1084_v3 }
 0xad3   :  { %972 = vmatprep.subr.mxu0 %v1041_v0 }
 0xad4   :  { %973 = vmatpush3.msra.mxu0 %v1093_v4 }
 0xb8d   :  { %v499_v22 = vpop.f32.mrf.mxu0 }
 0xb8e   :  { %v503_v23 = vadd.f32 %v852_v21, %v499_v22 }
 0xb8f   :  { %v954_v24 = vpop.f32.mrf.mxu0 }
 0xb90   :  { %1017 = vtanh.f32 %v503_v23  ;;  %v504_v26 = vmul.f32 0.5, %v503_v23 }
 0xb92   :  { %1019 = vtanh.f32 %v504_v26 }
 0xb9d   :  { %v1018_v25 = vpop.eup %1017 }
 0xb9e   :  { %511 = vrot.lane.b32.xlu1 %v1018_v25, %s1043_s18 }
 0xb9f   :  { %v1020_v27 = vpop.eup %1019 }
 0xba0   :  { %v506_v28 = vmul.f32 0.5, %v1020_v27 }
 0xba2   :  { %v507_v29 = vadd.f32 0.5, %v506_v28 }
 0xba4   :  { %v509_v32 = vmul.f32 %v507_v29, %v419_v16 }
 0xc10   :  { %v512_v30 = vpop.permute.xlu1 %511 }
 0xc11   :  { %v514_v31 = vmul.f32 %v512_v30, %v507_v29 }
 0xc13   :  { %516 = vrot.lane.b32.xlu0 %v514_v31, %s1044_s19 }
 0xc85   :  { %v517_v33 = vpop.permute.xlu0 %516 }
 0xc86   :  { %v519_v34 = vadd.f32 %v517_v33, %v509_v32 }
 0xc88   :  { %1021 = vtanh.f32 %v519_v34 }
 0xc95   :  { %v1022_v35 = vpop.eup %1021 }
 0xc96   :  { %522 = vrot.lane.b32.xlu1 %v1022_v35, %s1043_s18 }
 0xd08   :  { %v523_v36 = vpop.permute.xlu1 %522 }
 0xd09   :  { %v525_v37 = vmul.f32 %v523_v36, %v507_v29 }
 0xd0b   :  { %529 = vrot.lane.b32.xlu0 %v525_v37, %s1044_s19 }
 0xd7d   :  { %v530_v38 = vpop.permute.xlu0 %529 }
 0xd7e   :  { %964 = vmatmul.mubr.msk.f32.vlgmr.msra.gmra.mxu1 %vm25_vm2, %v530_v38 }
 0xd7f   :  { %978 = vmatpush3.msra.mxu1 %v1065_v1  ;;  %985 = vmatprep.mubr.msk.f32.mxu1 %vm1042_vm1, %v1041_v0 }
 0xd80   :  { %979 = vmatprep.subr.mxu1 %v1041_v0 }
 0xd81   :  { %980 = vmatpush3.msra.mxu1 %v1070_v2 }
 0xd82   :  { %981 = vmatprep.subr.mxu1 %v1041_v0 }
 0xd83   :  { %982 = vmatpush3.msra.mxu1 %v1084_v3 }
 0xd84   :  { %983 = vmatprep.subr.mxu1 %v1041_v0 }
 0xd85   :  { %984 = vmatpush3.msra.mxu1 %v1093_v4 }
 0xe3e   :  { %v599_v1 = vpop.f32.mrf.mxu1 }
 0xe3f   :  { %v603_v40 = vadd.f32 %v854_v39, %v599_v1 }
 0xe40   :  { %v965_v41 = vpop.f32.mrf.mxu1 }
 0xe41   :  { %1023 = vtanh.f32 %v603_v40  ;;  %v604_v2 = vmul.f32 0.5, %v603_v40 }
 0xe43   :  { %1025 = vtanh.f32 %v604_v2 }
 0xe4e   :  { %v1024_v42 = vpop.eup %1023 }
 0xe4f   :  { %611 = vrot.lane.b32.xlu1 %v1024_v42, %s1043_s18 }
 0xe50   :  { %v1026_v43 = vpop.eup %1025 }
 0xe51   :  { %v606_v44 = vmul.f32 0.5, %v1026_v43 }
 0xe53   :  { %v607_v3 = vadd.f32 0.5, %v606_v44 }
 0xe55   :  { %v609_v4 = vmul.f32 %v607_v3, %v519_v34 }
 0xec1   :  { %v612_v45 = vpop.permute.xlu1 %611 }
 0xec2   :  { %v614_v0 = vmul.f32 %v612_v45, %v607_v3 }
 0xec4   :  { %616 = vrot.lane.b32.xlu0 %v614_v0, %s1044_s19 }
 0xf36   :  { %v617_v46 = vpop.permute.xlu0 %616 }
 0xf37   :  { %v619_v47 = vadd.f32 %v617_v46, %v609_v4 }
 0xf39   :  { %1027 = vtanh.f32 %v619_v47 }
 0xf46   :  { %v1028_v48 = vpop.eup %1027 }
 0xf47   :  { %622 = vrot.lane.b32.xlu1 %v1028_v48, %s1043_s18 }
 0xfb9   :  { %v623_v49 = vpop.permute.xlu1 %622 }
 0xfba   :  { %v625_v50 = vmul.f32 %v623_v49, %v607_v3 }
 0xfbc   :  { %629 = vrot.lane.b32.xlu0 %v625_v50, %s1044_s19 }
0x102e   :  { %v630_v51 = vpop.permute.xlu0 %629 }
0x102f   :  { %975 = vmatmul.mubr.msk.f32.vlgmr.msra.gmra.mxu0 %vm25_vm2, %v630_v51 }
0x10ef   :  { %v699_v53 = vpop.f32.mrf.mxu0 }
0x10f0   :  { %v703_v54 = vadd.f32 %v856_v52, %v699_v53 }
0x10f1   :  { %v976_v55 = vpop.f32.mrf.mxu0 }
0x10f2   :  { %1029 = vtanh.f32 %v703_v54  ;;  %v704_v57 = vmul.f32 0.5, %v703_v54 }
0x10f4   :  { %1031 = vtanh.f32 %v704_v57 }
0x10ff   :  { %v1030_v56 = vpop.eup %1029 }
0x1100   :  { %711 = vrot.lane.b32.xlu1 %v1030_v56, %s1043_s18 }
0x1101   :  { %v1032_v58 = vpop.eup %1031 }
0x1102   :  { %v706_v59 = vmul.f32 0.5, %v1032_v58 }
0x1104   :  { %v707_v60 = vadd.f32 0.5, %v706_v59 }
0x1106   :  { %v709_v63 = vmul.f32 %v707_v60, %v619_v47 }
0x1172   :  { %v712_v61 = vpop.permute.xlu1 %711 }
0x1173   :  { %v714_v62 = vmul.f32 %v712_v61, %v707_v60 }
0x1175   :  { %716 = vrot.lane.b32.xlu0 %v714_v62, %s1044_s19 }
0x11e7   :  { %v717_v5 = vpop.permute.xlu0 %716 }
0x11e8   :  { %v719_v6 = vadd.f32 %v717_v5, %v709_v63 }
0x11ea   :  { %1033 = vtanh.f32 %v719_v6 }
0x11f7   :  { %v1034_v7 = vpop.eup %1033 }
0x11f8   :  { %722 = vrot.lane.b32.xlu1 %v1034_v7, %s1043_s18 }
0x126a   :  { %v723_v8 = vpop.permute.xlu1 %722 }
0x126b   :  { %v725_v9 = vmul.f32 %v723_v8, %v707_v60 }
0x126d   :  { %729 = vrot.lane.b32.xlu0 %v725_v9, %s1044_s19 }
0x12df   :  { %v730_v10 = vpop.permute.xlu0 %729 }
0x12e0   :  { %986 = vmatmul.mubr.msk.f32.vlgmr.msra.gmra.mxu1 %vm25_vm2, %v730_v10 }
0x13a0   :  { %v799_v12 = vpop.f32.mrf.mxu1 }
0x13a1   :  { %v803_v13 = vadd.f32 %v858_v11, %v799_v12 }
0x13a2   :  { %v987_v14 = vpop.f32.mrf.mxu1 }
0x13a3   :  { %1035 = vtanh.f32 %v803_v13  ;;  %v804_v16 = vmul.f32 0.5, %v803_v13 }
0x13a5   :  { %1037 = vtanh.f32 %v804_v16 }
0x13b0   :  { %v1036_v15 = vpop.eup %1035 }
0x13b1   :  { %811 = vrot.lane.b32.xlu1 %v1036_v15, %s1043_s18 }
0x13b2   :  { %v1038_v17 = vpop.eup %1037 }
0x13b3   :  { %v806_v18 = vmul.f32 0.5, %v1038_v17 }
0x13b5   :  { %v807_v19 = vadd.f32 0.5, %v806_v18 }
0x13b7   :  { %v809_v22 = vmul.f32 %v807_v19, %v719_v6 }
0x1423   :  { %v812_v20 = vpop.permute.xlu1 %811 }
0x1424   :  { %v814_v21 = vmul.f32 %v812_v20, %v807_v19 }
0x1426   :  { %816 = vrot.lane.b32.xlu0 %v814_v21, %s1044_s19 }
0x1498   :  { %v817_v23 = vpop.permute.xlu0 %816 }
0x1499   :  { %v819_v24 = vadd.f32 %v817_v23, %v809_v22 }
0x149b   :  { %1039 = vtanh.f32 %v819_v24 }
0x14a8   :  { %v1040_v25 = vpop.eup %1039 }
0x14a9   :  { %822 = vrot.lane.b32.xlu1 %v1040_v25, %s1043_s18 }
0x14ad   :  { %833 = vrot.lane.b32.xlu1 %v819_v24, %s1045_s0 }
0x151b   :  { %v823_v26 = vpop.permute.xlu1 %822 }
0x151c   :  { %v825_v27 = vmul.f32 %v823_v26, %v807_v19 }
0x151e   :  { %827 = vrot.lane.b32.xlu0 %v825_v27, %s1044_s19 }
0x151f   :  { %v834_v28 = vpop.permute.xlu1 %833 }
0x1520   :  { %836 = vst.msk [vmem:[#allocation3] sm:$0x3] %vm15_vm0, %v834_v28 }
0x1590   :  { %v828_v29 = vpop.permute.xlu0 %827 }
0x1591   :  { %831 = vst.msk [vmem:[#allocation2] sm:$0x3] %vm15_vm0, %v828_v29  ;;  %840 = vst.msk [vmem:[%s1238_s2] sm:$0x3] %vm15_vm0, %v828_v29 }

</bundles_post_ra>
